<compile_context>
chip_gen: v7x
topology: tpu7x:2x2x1
jax: 0.10.0
libtpu: 0.0.40
codegen_flags: <defaults>
</compile_context>

<pallas_src>
import math

import jax
import jax.numpy as jnp
from jax.experimental import pallas as pl
from jax.experimental.pallas import tpu as pltpu


def _tile_kernel(x_ref, o_ref):
    # x_ref: (1, N) flattened input row for batch b (lane-dense last dim)
    # o_ref: (T, N) output slab holding T replicas of that row
    o_ref[...] = jnp.broadcast_to(x_ref[...], o_ref.shape)


def tile(x: jax.Array, out_len: int, *, target_block_bytes: int = 2 * 1024 * 1024) -> jax.Array:
    """Equivalent of torch.stack([x] * out_len, dim=1) for NCHW (or any N-D) input."""
    B = x.shape[0]
    inner = x.shape[1:]
    N = math.prod(inner)
    itemsize = jnp.dtype(x.dtype).itemsize

    # Flatten payload: input (B, 1, N), output (B, out_len, N). Last two block
    # dims are then (1|T, N) with N equal to the full array dim -> lane-dense,
    # unmasked stores.
    x_flat = x.reshape(B, 1, N)

    # Pick T (replicas per output block) so one buffer is ~target_block_bytes:
    # big enough to amortize per-step pipeline overhead, small enough to keep
    # double-buffering alive within v7x's 64 MiB VMEM.
    max_t = max(1, target_block_bytes // max(1, N * itemsize))
    if max_t >= out_len:
        T = out_len
    elif max_t >= 8:
        T = (max_t // 8) * 8  # keep sublane-aligned chunks when splitting
    else:
        T = max_t
    grid_t = pl.cdiv(out_len, T)

    out_flat = pl.pallas_call(
        _tile_kernel,
        out_shape=jax.ShapeDtypeStruct((B, out_len, N), x.dtype),
        grid_spec=pltpu.PrefetchScalarGridSpec(
            num_scalar_prefetch=0,
            grid=(B, grid_t),
            in_specs=[
                # Block index constant across t -> the input row is DMA'd once
                # per batch element and reused for every replicated block.
                pl.BlockSpec((None, 1, N), lambda b, t: (b, 0, 0)),
            ],
            # Leading batch dim squeezed; each step writes a (T, N) slab.
            out_specs=pl.BlockSpec((None, T, N), lambda b, t: (b, t, 0)),
        ),
        compiler_params=pltpu.CompilerParams(
            dimension_semantics=("parallel", "parallel"),
        ),
    )(x_flat)

    return out_flat.reshape(B, out_len, *inner)


if __name__ == "__main__":
    key = jax.random.PRNGKey(0)
    B, C, H, W = 2, 4, 16, 16
    out_len = 3

    x = jax.random.normal(key, (B, C, H, W), dtype=jnp.float32)

    y = tile(x, out_len)
    y = jax.block_until_ready(y)

    # Reference: jnp.stack([x] * out_len, axis=1)
    ref = jnp.stack([x] * out_len, axis=1)
    assert y.shape == (B, out_len, C, H, W), y.shape
    assert y.dtype == x.dtype
    assert jnp.array_equal(y, ref)

    print("KERNEL_OK")
</pallas_src>

<mosaic_0001>
module attributes {stable_mosaic.version = 11 : i64} {
  func.func @_tile_kernel(%arg0: i32, %arg1: i32, %arg2: memref<1x1x1024xf32, #tpu.memory_space<vmem>>, %arg3: memref<1x3x1024xf32, #tpu.memory_space<vmem>>) attributes {dimension_semantics = [#tpu.dimension_semantics<parallel>, #tpu.dimension_semantics<parallel>], iteration_bounds = array<i64: 2, 1>, scalar_prefetch = 0 : i64, scratch_operands = 0 : i64, tpu.core_type = #tpu.core_type<tc>, window_params = [{transform_indices = @transform_0, window_bounds = array<i64: 1, 1, 1024>}, {transform_indices = @transform_1, window_bounds = array<i64: 1, 3, 1024>}]} {
    %c0 = arith.constant 0 : index
    %c0_0 = arith.constant 0 : index
    %c0_1 = arith.constant 0 : index
    %0 = vector.load %arg2[%c0, %c0_0, %c0_1] : memref<1x1x1024xf32, #tpu.memory_space<vmem>>, vector<1x1x1024xf32>
    %1 = vector.shape_cast %0 : vector<1x1x1024xf32> to vector<1x1024xf32>
    %2 = vector.shape_cast %1 : vector<1x1024xf32> to vector<1x1024xf32>
    %3 = vector.broadcast %2 : vector<1x1024xf32> to vector<3x1024xf32>
    %c0_2 = arith.constant 0 : index
    %c0_3 = arith.constant 0 : index
    %c0_4 = arith.constant 0 : index
    %4 = vector.load %arg3[%c0_2, %c0_3, %c0_4] : memref<1x3x1024xf32, #tpu.memory_space<vmem>>, vector<1x3x1024xf32>
    %5 = vector.shape_cast %4 : vector<1x3x1024xf32> to vector<3x1024xf32>
    %6 = vector.shape_cast %3 : vector<3x1024xf32> to vector<1x3x1024xf32>
    tpu.vector_store %arg3[%c0_2, %c0_3, %c0_4], %6 {strides = array<i32>} : memref<1x3x1024xf32, #tpu.memory_space<vmem>>, vector<1x3x1024xf32>,
    return
  }
  func.func @transform_0(%arg0: i32, %arg1: i32) -> (i32, i32, i32) {
    %c0_i32 = arith.constant 0 : i32
    %c0_i32_0 = arith.constant 0 : i32
    %c0_i32_1 = arith.constant 0 : i32
    return %arg0, %c0_i32, %c0_i32_0 : i32, i32, i32
  }
  func.func @transform_1(%arg0: i32, %arg1: i32) -> (i32, i32, i32) {
    %c0_i32 = arith.constant 0 : i32
    %c0_i32_0 = arith.constant 0 : i32
    return %arg0, %arg1, %c0_i32 : i32, i32, i32
  }
}

</mosaic_0001>

<bundles_post_ra>
// kernel: tpu_custom_call.1
= control target key start
LH: loop header
LB: loop body
LE: loop exit
PB: predicated region body
PF: predicated region fallthrough
CT: control target
= control target key end

     0   :  { %6 = vsyncpa [#allocation3], 0  ;;  %s586_s0 = inlined_call_operand.hbm [shape: f32[2,1,1024], index: 0, kind: input, shape index: {}]   ;;  %s587_s1 = inlined_call_operand.vmem [shape: f32[2,3,1024], index: 1, kind: output, shape index: {}]  }
   0x1   :  { %8 = vsyncpa [#allocation3 + $0x1], 0  ;;  %s461_s6 = smov 0   ;;  %s463_s7 = smov 0  }
   0x2   :  { %s465_s8 = smov 0   ;;  %s467_s9 = smov 0  }
   0x3   :  { %s469_s10 = smov 0   ;;  %s471_s11 = smov 0  }
   0x4 LB: > { %s298_s12 = sadd.s32 4294967295, %s448_s11   ;;  %s26_s13 = sadd.s32 1, %s444_s10  ;;  %s448_s11 = sphi %s471_s11, %s14_s11   ;;  %s444_s10 = sphi %s469_s10, %s597_s10   ;;  %s440_s9 = sphi %s467_s9, %s596_s9   ;;  %s436_s8 = sphi %s465_s8, %s595_s8   ;;  %s432_s7 = sphi %s463_s7, %s594_s7   ;;  %s428_s6 = sphi %s461_s6, %s593_s6  }
   0x5   : > { %p28_p0 = scmp.ge.s32.totalorder %s26_s13, 2  ;;  %s33_s14 = sadd.s32 1, %s436_s8 }
   0x6   : > { %p40_p1 = scmp.ne.s32.totalorder %s436_s8, %s432_s7  ;;  %p41_p2 = scmp.eq.s32.totalorder %s448_s11, 0 }
   0x7   : > { %s599_s13 = smov (%p28_p0, %s26_s13), 0  ;;  %p46_p4 = scmp.ne.s32.totalorder %s432_s7, %s428_s6 }
   0x8   : > { %p497_p3 = por %p41_p2, %p40_p1  ;;  %s30_s16 = ssub.s32 %s444_s10, %s599_s13 }
   0x9   : > { %p47_p5 = scmp.eq.s32.totalorder %s298_s12, 0  ;;  %p31_p6 = scmp.eq.s32.totalorder %s30_s16, 0 }
   0xa   : > { %p319_p8 = scmp.lt.s32.totalorder %s448_s11, 2  ;;  %s98_s19 = sand.u32 1, %s436_s8  }
   0xb   : > { %p504_p7 = por %p47_p5, %p46_p4  ;;  %s311_s20 = sshll.u32 %s444_s10, 7 }
   0xc   : > { %s510_s18 = scalar_select %p31_p6, %s436_s8, %s33_s14  }
   0xd   : > { %s302_s21 = sshll.u32 %s98_s19, 3  ;;  %s517_s24 = scalar_lea.hbm %s586_s0, %s311_s20 }
   0xe   : > { %s102_s25 = scalar_lea.vmem [#allocation2], %s302_s21  ;;  %p521_p9 = pnand %p319_p8, %p497_p3 }
   0xf   : > { %s110_s26 = sshll.u32 %s102_s25, 4  ;;  %s99_s28 = scalar_lea.sflag [#allocation3], %s98_s19  ;;  %s525_s26 = int_to_ptr.vmem [resolvable:$true] %s110_s26 }
  0x10   : > { %s368_s29 = scalar_lea.hbm %s517_s24, 128  ;;  %p370_p13 = pneg %p521_p9 }
  0x11   : > { %p369_p12 = scmp.ne.s32.totalorder %s517_s24, %s368_s29  ;;  %s373_s3 = scalar_lea.hbm %s586_s0, 256 }
  0x12   : > { %p374_p2 = scmp.lt.u32.totalorder %s517_s24, %s586_s0  ;;  %p375_p3 = scmp.lt.u32.totalorder %s373_s3, %s368_s29 }
  0x13   : > { %p371_p0 = pnand %p370_p13, %p369_p12  ;;  %p377_p5 = scmp.lt.u32.totalorder %s368_s29, %s517_s24 }
  0x14   : > { %p376_p4 = por %p375_p3, %p374_p2 }
  0x15   : > { %p372_p1 = pneg %p371_p0 }
  0x16   : > { %p378_p6 = por %p377_p5, %p376_p4 }
  0x18   : > { %p379_p8 = pnand %p378_p6, %p372_p1 }
  0x1a   : > { %382 = shalt.err (!%p379_p8)
}
  0x1b   : > { %s383_s6 = scalar_lea.vmem %s525_s26, 128  ;;  %s450_s12 = smov [#allocation2]  }
  0x1c   : > { %p384_p12 = scmp.ne.s32.totalorder %s525_s26, %s383_s6  ;;  %s388_s14 = sshll.u32 %s450_s12, 4  ;;  %s389_s14 = int_to_ptr.vmem [resolvable:$false] %s388_s14 }
  0x1d   : > { %s390_s15 = scalar_lea.vmem %s389_s14, 256  ;;  %p391_p11 = scmp.lt.s32.totalorder %s525_s26, %s389_s14 }
  0x1e   : > { %p386_p0 = pnand %p384_p12, %p370_p13  ;;  %p392_p2 = scmp.lt.s32.totalorder %s390_s15, %s383_s6 }
  0x20   : > { %p387_p10 = pneg %p386_p0  ;;  %p393_p3 = por %p392_p2, %p391_p11 }
  0x22   : > { %p394_p4 = pnand %p393_p3, %p387_p10 }
  0x24   : > { %397 = shalt.err (!%p394_p4)
}
  0x25   : > { %318 = dma.hbm_to_vmem [thread:$0]  (!%p521_p9), %s517_s24, 128, %s525_s26, %s99_s28  }
  0x26   : > { %p591_p1 = scmp.lt.s32.totalorder %s448_s11, 3  ;;  %p592_p5 = scmp.ge.s32.totalorder %s448_s11, 1 }
  0x28   : > { %p116_p13 = pnand %p592_p5, %p591_p1 }
  0x29   : > { %s121_s16 = sand.u32 (!%p116_p13), 1, %s432_s7  }
  0x2a   : > { %119 = sbr.rel (%p116_p13) target bundleno = 62 (0x3e), region = 24  ;;  %s306_s19 = sshll.u32 (!%p116_p13), %s121_s16, 3 }
  0x2b   : > { %s122_s20 = scalar_lea.sflag (!%p116_p13), [#allocation3], %s121_s16  ;;  %s125_s21 = scalar_lea.vmem (!%p116_p13), [#allocation2], %s306_s19 }
  0x31   : > { %423 = dma.done.wait (%p504_p7), %s122_s20, 128  }
  0x32   : > { %425 = vsyncadd (%p504_p7), %s122_s20, 4294967168  ;;  %p148_p10 = scmp.lt.s32.totalorder %s440_s9, 1  ;;  %v159_v0 = vlaneseq  ;;  %v157_v10 = vld [vmem:[%s125_s21] sm:$0xff] }
  0x34   : > { %s601_s9 = smov (!%p148_p10, %s440_s9), 1  ;;  %v160_v1 = vshrl.u32 %v159_v0, 7 }
  0x35   : > { %s312_s22 = sshll.u32 %s601_s9, 5 }
  0x36   : > { %v161_v2 = vsub.s32 0, %v160_v1  ;;  %v165_v3 = vsub.s32 1, %v160_v1  ;;  %v169_v4 = vsub.s32 2, %v160_v1  ;;  %v173_v5 = vsub.s32 3, %v160_v1  ;;  %s156_s24 = scalar_lea.vmem %s587_s1, %s312_s22 }
  0x37   : > { %v177_v6 = vsub.s32 4, %v160_v1  ;;  %v181_v7 = vsub.s32 5, %v160_v1  ;;  %v185_v8 = vsub.s32 6, %v160_v1  ;;  %v189_v9 = vsub.s32 7, %v160_v1 }
  0x38   : > { %v162_v11 = vrot.slane %v157_v10, %v161_v2  ;;  %v166_v12 = vrot.slane %v157_v10, %v165_v3  ;;  %v170_v13 = vrot.slane %v157_v10, %v169_v4  ;;  %v174_v14 = vrot.slane %v157_v10, %v173_v5 }
  0x39   : > { %v178_v15 = vrot.slane %v157_v10, %v177_v6  ;;  %v182_v16 = vrot.slane %v157_v10, %v181_v7  ;;  %v186_v17 = vrot.slane %v157_v10, %v185_v8  ;;  %v190_v18 = vrot.slane %v157_v10, %v189_v9 }
  0x3a   : > { %v191_v19 = vcombine.low %v162_v11, %v166_v12  ;;  %v192_v20 = vcombine.low %v170_v13, %v174_v14 }
  0x3b   : > { %v193_v21 = vcombine.low %v178_v15, %v182_v16  ;;  %v194_v22 = vcombine.low %v186_v17, %v190_v18 }
  0x3c   : > { %199 = vst [vmem:[%s156_s24] sm:$0x77] %v191_v19  ;;  %200 = vst [vmem:[%s156_s24 + $0x8] sm:$0x77] %v192_v20 }
  0x3d   : > { %201 = vst [vmem:[%s156_s24 + $0x10] sm:$0x77] %v193_v21  ;;  %202 = vst [vmem:[%s156_s24 + $0x18] sm:$0x77] %v194_v22 }
  0x3e PF: > { %s14_s11 = sadd.s32 1, %s448_s11   ;;  %s593_s6 = smov %s432_s7 }
  0x3f   : > { %p11_p7 = scmp.ge.s32.totalorder %s14_s11, 4   ;;  %s594_s7 = smov %s436_s8 }
  0x40   : > { %s595_s8 = smov %s510_s18  ;;  %s596_s9 = smov %s444_s10 }
  0x41   : > { %s597_s10 = smov %s599_s13  ;;  %13 = sbr.rel (!%p11_p7) target bundleno = 4 (0x4), region = 64 }
  0x48   :  { %232 = vsyncpa [#allocation3], 1 }
  0x49   :  { %234 = vsyncpa [#allocation3 + $0x1], 1 }

</bundles_post_ra>
